<compile_context>
chip_gen: v6e
topology: v6e:2x2x1
jax: 0.10.0
libtpu: 0.0.40
codegen_flags: <defaults>
</compile_context>

<pallas_src>
import functools

import jax
import jax.numpy as jnp
from jax import lax
from jax.experimental import pallas as pl
from jax.experimental.pallas import tpu as pltpu


def _round_up(v, m):
    return ((v + m - 1) // m) * m


def _conv1x1_kernel(x_ref, w_ref, b_ref, o_ref, *, compute_dtype):
    # x_ref: (1, Cin, tp)  NCHW slab (channels x pixels), native input dtype
    # w_ref: (Cin, Cout)   compute_dtype
    # b_ref: (1, Cout)     f32
    # o_ref: (1, tp, Cout) out_dtype
    x = x_ref[0].astype(compute_dtype)                  # in-kernel cast (free VPU)
    # Contract the channel axis (dim 0 of both operands) -> (tp, Cout), f32 acc.
    acc = lax.dot_general(
        x, w_ref[...],
        dimension_numbers=(((0,), (0,)), ((), ())),
        preferred_element_type=jnp.float32,
    )
    o_ref[0] = (acc + b_ref[...]).astype(o_ref.dtype)


def _pick_pixel_tile(N, HW, tp_max):
    """Pixel tile: big enough to near the HBM roofline (>=512 is ~85%+), small
    enough that (a) double-buffered blocks fit scoped VMEM and (b) the grid has
    >= ~4 total steps so prefetch/compute/writeback overlap and v7x's two
    TensorCores both get work (fixes the old HW<=tp single-tile path)."""
    MIN_STEPS = 4
    tp_max = min(tp_max, 4096)           # v7x 64 MiB VMEM: no gain beyond this
    if HW <= 128:
        return HW                        # tiny level: full-dim block
    tp = _round_up(min(tp_max, HW), 128)
    tiles_per_batch = pl.cdiv(MIN_STEPS, N)      # want N * tiles >= MIN_STEPS
    if pl.cdiv(HW, tp) < tiles_per_batch:
        tp = _round_up(pl.cdiv(HW, tiles_per_batch), 128)
    return max(tp, 128)


def _vmem_estimate_bytes(Cin, Cout, tp, x_isz, w_isz, out_isz):
    """Rough double-buffered VMEM footprint (Cout lane-pads 272 -> 384)."""
    cout_pad = _round_up(Cout, 128)
    in_blk = _round_up(Cin, 8) * _round_up(tp, 128) * x_isz
    w_blk = _round_up(Cin, 8) * cout_pad * w_isz
    b_blk = 8 * cout_pad * 4
    out_blk = _round_up(tp, 8) * cout_pad * out_isz
    acc_tmp = _round_up(tp, 8) * cout_pad * 4           # f32 matmul accumulator
    return 2 * (in_blk + w_blk + b_blk + out_blk) + acc_tmp


def landmark_head_forward(x_nchw, weight, bias, num_anchors=2, tp=1024,
                          compute_dtype=None, out_dtype=None):
    """LandmarkHead forward.

    x_nchw: (N, Cin, H, W)   activation in NCHW (as in PyTorch)
    weight: (Cout, Cin)      == torch Conv2d weight (Cout, Cin, 1, 1) squeezed
    bias:   (Cout,)
    Returns (N, H*W*num_anchors, 136) in `out_dtype` (default: x's dtype).

    compute_dtype: optionally run the matmul in e.g. bf16; the cast happens
      inside the kernel (no extra HBM pass), accumulation + bias stay f32.
    out_dtype: output store dtype; bf16 halves the dominant (~80%) HBM
      traffic of this op when downstream accepts it.
    """
    N, Cin, H, W = x_nchw.shape
    Cout = weight.shape[0]
    assert Cout == num_anchors * 136
    HW = H * W

    if compute_dtype is None:
        compute_dtype = x_nchw.dtype
    if out_dtype is None:
        out_dtype = x_nchw.dtype

    # Free (contiguous) reshape: no HBM transpose / pad / cast copies of x.
    x3 = x_nchw.reshape(N, Cin, HW)
    w = weight.T.astype(compute_dtype)                  # (Cin, Cout), tiny
    b = bias.reshape(1, Cout).astype(jnp.float32)

    tp = _pick_pixel_tile(N, HW, tp)
    grid = (N, pl.cdiv(HW, tp))

    vmem_est = _vmem_estimate_bytes(
        Cin, Cout, tp,
        jnp.dtype(x_nchw.dtype).itemsize,
        jnp.dtype(compute_dtype).itemsize,
        jnp.dtype(out_dtype).itemsize,
    )
    cp_kwargs = dict(dimension_semantics=("parallel", "parallel"))
    # v5e scoped-VMEM default is 16 MiB; only override when we'd get close.
    if vmem_est > 12 * (1 << 20):
        cp_kwargs["vmem_limit_bytes"] = min(int(vmem_est * 3 // 2), 64 * (1 << 20))

    # Note: weight/bias have constant index_maps (no re-DMA across the grid);
    # pipeline_mode=pl.Buffered(1) on them would reclaim ~100-200 KB VMEM but
    # is only worth it when tp is pushed against the v7x/v5e scoped ceiling.
    out = pl.pallas_call(
        functools.partial(_conv1x1_kernel, compute_dtype=compute_dtype),
        out_shape=jax.ShapeDtypeStruct((N, HW, Cout), out_dtype),
        grid_spec=pltpu.PrefetchScalarGridSpec(
            num_scalar_prefetch=0,
            grid=grid,
            in_specs=[
                pl.BlockSpec((1, Cin, tp), lambda n, p: (n, 0, p)),
                pl.BlockSpec((Cin, Cout), lambda n, p: (0, 0)),
                pl.BlockSpec((1, Cout), lambda n, p: (0, 0)),
            ],
            out_specs=pl.BlockSpec((1, tp, Cout), lambda n, p: (n, p, 0)),
        ),
        compiler_params=pltpu.CompilerParams(**cp_kwargs),
    )(x3, w, b)

    # Free reshape: (N, H*W, A*136) -> (N, H*W*A, 136); matches
    # permute(0, 2, 3, 1).contiguous().view(N, -1, 136).
    return out.reshape(N, H * W * num_anchors, 136)


if __name__ == "__main__":
    inchannels = 64
    num_anchors = 2
    cout = num_anchors * 136
    N, H, W = 2, 16, 16

    key = jax.random.PRNGKey(0)
    kx, kw, kb = jax.random.split(key, 3)

    x = jax.random.normal(kx, (N, inchannels, H, W), dtype=jnp.float32)
    # Conv2d(inC, A*136, 1) -> weight (Cout, Cin), bias (Cout,)
    bound = 1.0 / (inchannels ** 0.5)
    weight = jax.random.uniform(kw, (cout, inchannels), jnp.float32, -bound, bound)
    bias = jax.random.uniform(kb, (cout,), jnp.float32, -bound, bound)

    # Pure-JAX reference (1x1 conv == channel matmul), same permute/reshape semantics.
    ref = jnp.einsum("nchw,oc->nhwo", x, weight) + bias
    ref = ref.reshape(N, -1, 136)

    # f32 path (default dtypes).
    y = landmark_head_forward(x, weight, bias, num_anchors=num_anchors)
    y = jax.block_until_ready(y)
    assert y.shape == (N, H * W * num_anchors, 136), y.shape
    assert jnp.allclose(y, ref, atol=1e-4, rtol=1e-4), float(jnp.max(jnp.abs(y - ref)))

    # bf16 compute + bf16 output path (exercises the reduced-HBM-traffic knobs).
    y16 = landmark_head_forward(x, weight, bias, num_anchors=num_anchors,
                                compute_dtype=jnp.bfloat16, out_dtype=jnp.bfloat16)
    y16 = jax.block_until_ready(y16)
    assert y16.dtype == jnp.bfloat16
    err16 = float(jnp.max(jnp.abs(y16.astype(jnp.float32) - ref)))
    assert jnp.allclose(y16.astype(jnp.float32), ref, atol=5e-2, rtol=5e-2), err16

    print("KERNEL_OK")
</pallas_src>

<mosaic_0001>
module attributes {stable_mosaic.version = 11 : i64} {
  func.func @_conv1x1_kernel(%arg0: i32, %arg1: i32, %arg2: memref<1x64x128xf32, #tpu.memory_space<vmem>>, %arg3: memref<64x272xf32, #tpu.memory_space<vmem>>, %arg4: memref<1x272xf32, #tpu.memory_space<vmem>>, %arg5: memref<1x128x272xf32, #tpu.memory_space<vmem>>) attributes {dimension_semantics = [#tpu.dimension_semantics<parallel>, #tpu.dimension_semantics<parallel>], iteration_bounds = array<i64: 2, 2>, scalar_prefetch = 0 : i64, scratch_operands = 0 : i64, tpu.core_type = #tpu.core_type<tc>, window_params = [{transform_indices = @transform_0, window_bounds = array<i64: 1, 64, 128>}, {pipeline_mode = #tpu.pipeline_mode<synchronous>, transform_indices = @transform_1, window_bounds = array<i64: 64, 272>}, {pipeline_mode = #tpu.pipeline_mode<synchronous>, transform_indices = @transform_2, window_bounds = array<i64: 1, 272>}, {transform_indices = @transform_3, window_bounds = array<i64: 1, 128, 272>}]} {
    %c0 = arith.constant 0 : index
    %c0_0 = arith.constant 0 : index
    %c0_1 = arith.constant 0 : index
    %0 = vector.load %arg2[%c0, %c0_0, %c0_1] : memref<1x64x128xf32, #tpu.memory_space<vmem>>, vector<1x64x128xf32>
    %1 = vector.shape_cast %0 : vector<1x64x128xf32> to vector<64x128xf32>
    %c0_2 = arith.constant 0 : index
    %c0_3 = arith.constant 0 : index
    %2 = vector.load %arg3[%c0_2, %c0_3] : memref<64x272xf32, #tpu.memory_space<vmem>>, vector<64x272xf32>
    %cst = arith.constant dense<0.000000e+00> : vector<128x272xf32>
    %3 = tpu.matmul %1, %2, %cst {dimension_numbers = #tpu.dot_dimension_numbers<[0], [0], [1], [1], [0, 1, 1, 1], [], []>} : vector<64x128xf32>, vector<64x272xf32>, vector<128x272xf32> -> vector<128x272xf32>
    %c0_4 = arith.constant 0 : index
    %c0_5 = arith.constant 0 : index
    %4 = vector.load %arg4[%c0_4, %c0_5] : memref<1x272xf32, #tpu.memory_space<vmem>>, vector<1x272xf32>
    %5 = vector.broadcast %4 : vector<1x272xf32> to vector<128x272xf32>
    %6 = arith.addf %3, %5 : vector<128x272xf32>
    %c0_6 = arith.constant 0 : index
    %c0_7 = arith.constant 0 : index
    %c0_8 = arith.constant 0 : index
    %7 = vector.load %arg5[%c0_6, %c0_7, %c0_8] : memref<1x128x272xf32, #tpu.memory_space<vmem>>, vector<1x128x272xf32>
    %8 = vector.shape_cast %7 : vector<1x128x272xf32> to vector<128x272xf32>
    %9 = vector.shape_cast %6 : vector<128x272xf32> to vector<1x128x272xf32>
    tpu.vector_store %arg5[%c0_6, %c0_7, %c0_8], %9 {strides = array<i32>} : memref<1x128x272xf32, #tpu.memory_space<vmem>>, vector<1x128x272xf32>,
    return
  }
  func.func @transform_0(%arg0: i32, %arg1: i32) -> (i32, i32, i32) {
    %c0_i32 = arith.constant 0 : i32
    %c0_i32_0 = arith.constant 0 : i32
    return %arg0, %c0_i32, %arg1 : i32, i32, i32
  }
  func.func @transform_1(%arg0: i32, %arg1: i32) -> (i32, i32) {
    %c0_i32 = arith.constant 0 : i32
    %c0_i32_0 = arith.constant 0 : i32
    %c0_i32_1 = arith.constant 0 : i32
    return %c0_i32, %c0_i32_0 : i32, i32
  }
  func.func @transform_2(%arg0: i32, %arg1: i32) -> (i32, i32) {
    %c0_i32 = arith.constant 0 : i32
    %c0_i32_0 = arith.constant 0 : i32
    %c0_i32_1 = arith.constant 0 : i32
    return %c0_i32, %c0_i32_0 : i32, i32
  }
  func.func @transform_3(%arg0: i32, %arg1: i32) -> (i32, i32, i32) {
    %c0_i32 = arith.constant 0 : i32
    %c0_i32_0 = arith.constant 0 : i32
    return %arg0, %arg1, %c0_i32 : i32, i32, i32
  }
}

</mosaic_0001>

<bundles_post_ra>
// kernel: tpu_custom_call.1
= control target key start
LH: loop header
LB: loop body
LE: loop exit
PB: predicated region body
PF: predicated region fallthrough
CT: control target
= control target key end

     0   :  { %s1543_s0 = inlined_call_operand.hbm [shape: f32[2,64,256], index: 0, kind: input, shape index: {}]   ;;  %s1544_s1 = inlined_call_operand.hbm [shape: f32[64,272], index: 1, kind: input, shape index: {}]   ;;  %s1545_s2 = inlined_call_operand.vmem [shape: f32[1,272], index: 2, kind: input, shape index: {}]   ;;  %s1546_s3 = inlined_call_operand.vmem [shape: f32[2,256,272], index: 3, kind: output, shape index: {}]  }
   0x1   :  { %1550 = sst [smem:[#allocation9_spill]] %s1544_s1 }
   0x2   :  { %8 = vsyncpa [#allocation3], 0 }
   0x3   :  { %10 = vsyncpa [#allocation3 + $0x1], 0 }
   0x4   :  { %11 = vsyncpa [#allocation5], 0  ;;  %s1203_s12 = smov 0   ;;  %s1205_s13 = smov 0  }
   0x5   :  { %s1207_s14 = smov 0   ;;  %s1209_s15 = smov 0  }
   0x6   :  { %s1211_s16 = smov 0   ;;  %s1213_s17 = smov 0  }
   0x7   :  { %s1215_s18 = smov 0   ;;  %s1217_s19 = smov 0  }
   0x8 LB: > { %s832_s20 = sadd.s32 4294967295, %s1173_s19   ;;  %s38_s21 = sadd.s32 1, %s1153_s14  ;;  %s1173_s19 = sphi %s1217_s19, %s17_s19   ;;  %s1169_s18 = sphi %s1215_s18, %s1567_s18   ;;  %s1165_s17 = sphi %s1213_s17, %s1566_s17   ;;  %s1161_s16 = sphi %s1211_s16, %s1565_s16   ;;  %s1157_s15 = sphi %s1209_s15, %s1564_s15   ;;  %s1153_s14 = sphi %s1207_s14, %s1563_s14   ;;  %s1149_s13 = sphi %s1205_s13, %s1562_s13   ;;  %s1145_s12 = sphi %s1203_s12, %s1561_s12  }
   0x9   : > { %p45_p0 = scmp.ne.s32.totalorder %s1153_s14, %s1149_s13  ;;  %p46_p1 = scmp.eq.s32.totalorder %s1173_s19, 0 }
   0xa   : > { %p51_p2 = scmp.ne.s32.totalorder %s1149_s13, %s1145_s12  ;;  %p1247_p3 = scmp.eq.s32.totalorder %s832_s20, 0 }
   0xb   : > { %p47_p4 = por %p46_p1, %p45_p0  ;;  %p834_p5 = scmp.ge.s32.totalorder %s1173_s19, 1 }
   0xc   : > { %p1254_p6 = por %p1247_p3, %p51_p2  ;;  %p132_p7 = scmp.lt.s32.totalorder %s1173_s19, 5 }
   0xd   : > { %s1175_s25 = smov [#allocation4]   ;;  %p976_p10 = scmp.lt.s32.totalorder %s1173_s19, 4 }
   0xe   : > { %s1552_s23 = scalar_select %p1254_p6, 1, 0 }
   0xf   : > { %p1259_p8 = pnand %p834_p5, %p132_p7  ;;  %s144_s26 = sshll.u32 %s1175_s25, 4  ;;  %s145_s26 = int_to_ptr.vmem [resolvable:$true] %s144_s26 }
  0x10   : > { %p1272_p12 = pnand %p976_p10, %p47_p4  ;;  %s1060_s29 = scalar_lea.vmem %s145_s26, 3072 }
  0x11   : > { %s1553_s24 = scalar_select %p1259_p8, 1, 0 }
  0x12   : > { %p967_p9 = pneg %p1259_p8  ;;  %p1061_p0 = scmp.ne.s32.totalorder %s145_s26, %s1060_s29 }
  0x13   : > { %p1068_p5 = scmp.lt.s32.totalorder %s145_s26, %s145_s26  ;;  %p1069_p7 = scmp.lt.s32.totalorder %s1060_s29, %s1060_s29 }
  0x14   : > { %p1268_p11 = pnand %p967_p9, %p1247_p3 }
  0x15   : > { %p1070_p6 = por %p1069_p7, %p1068_p5 }
  0x16   : > { %p1051_p13 = pneg %p1268_p11 }
  0x18   : > { %p1063_p1 = pnand %p1061_p0, %p1051_p13 }
  0x1a   : > { %p1064_p2 = pneg %p1063_p1 }
  0x1c   : > { %p1071_p8 = pnand %p1070_p6, %p1064_p2 }
  0x1e   : > { %1074 = shalt.err (!%p1071_p8)
}
  0x1f   : > { %s1176_s30 = smov 384   ;;  %s1177_s4 = smov 24  }
  0x20   : > { %s1556_s1 = sld [smem:[#allocation9_spill]]  ;;  %s26_s7 = sadd.s32 1, %s1165_s17 }
  0x21   : > { %s29_s8 = sadd.s32 1, %s1169_s18  ;;  %p27_p4 = scmp.ge.s32.totalorder %s26_s7, 2 }
  0x22   : > { %s161_s9 = sand.u32 1, %s1153_s14   ;;  %s838_s12 = sshll.u32 %s1169_s18, 4 }
  0x23   : > { %s837_s10 = sshll.u32 %s161_s9, 6  ;;  %s1569_s7 = smov (%p27_p4, %s26_s7), 0 }
  0x24   : > { %1557 = sst [smem:[#allocation8_spill]] %s1569_s7  ;;  %s1571_s8 = smov (!%p27_p4, %s29_s8), %s1169_s18 }
  0x25   : > { %s34_s11 = ssub.s32 %s1165_s17, %s1569_s7  ;;  %p31_p6 = scmp.ge.s32.totalorder %s1571_s8, 2 }
  0x26   : > { %970 = dma.hbm_to_vmem [thread:$0]  (!%p1268_p11), %s1556_s1, 3072, %s145_s26, [#allocation5], %s1176_s30, %s1176_s30, %s1177_s4  }
  0x27   : > { %s170_s20 = sadd.s32 %s1165_s17, %s838_s12  ;;  %s165_s25 = scalar_lea.vmem [#allocation2], %s837_s10 }
  0x28   : > { %s173_s27 = sshll.u32 %s165_s25, 4  ;;  %s1573_s8 = smov (%p31_p6, %s1571_s8), 0  ;;  %s174_s27 = int_to_ptr.vmem [resolvable:$true] %s173_s27 }
  0x29   : > { %s839_s26 = sshll.u32 %s170_s20, 7  ;;  %s33_s29 = ssub.s32 %s1169_s18, %s1573_s8 }
  0x2a   : > { %s172_s5 = scalar_lea.hbm %s1543_s0, %s839_s26  ;;  %s35_s6 = sor.u32 %s34_s11, %s33_s29 }
  0x2b   : > { %p36_p8 = scmp.eq.s32.totalorder %s35_s6, 0  ;;  %s162_s7 = scalar_lea.sflag [#allocation3], %s161_s9 }
  0x2c   : > { %p1077_p9 = pneg %p1272_p12  ;;  %s1088_s10 = scalar_lea.vmem %s174_s27, 1024 }
  0x2d   : > { %s1303_s1 = scalar_select %p36_p8, %s1153_s14, %s38_s21  }
  0x2e   : > { %p1089_p10 = scmp.ne.s32.totalorder %s174_s27, %s1088_s10  ;;  %s1178_s12 = smov [#allocation2]  }
  0x2f   : > { %s1093_s20 = sshll.u32 %s1178_s12, 4  ;;  %s1094_s20 = int_to_ptr.vmem [resolvable:$false] %s1093_s20 }
  0x30   : > { %p1091_p11 = pnand %p1089_p10, %p1077_p9  ;;  %s1095_s25 = scalar_lea.vmem %s1094_s20, 2048 }
  0x31   : > { %p1096_p0 = scmp.lt.s32.totalorder %s174_s27, %s1094_s20  ;;  %p1097_p1 = scmp.lt.s32.totalorder %s1095_s25, %s1088_s10 }
  0x32   : > { %p1092_p13 = pneg %p1091_p11 }
  0x33   : > { %p1098_p2 = por %p1097_p1, %p1096_p0 }
  0x35   : > { %p1099_p5 = pnand %p1098_p2, %p1092_p13 }
  0x37   : > { %1102 = shalt.err (!%p1099_p5)
}
  0x38   : > { %s1179_s11 = smov 256   ;;  %s1180_s21 = smov 128  }
  0x39   : > { %s1181_s26 = smov 8   ;;  %p1558_p7 = scmp.ne.s32.totalorder %s1553_s24, 0 }
  0x3a   : > { %974 = dma.hbm_to_vmem [thread:$0]  (!%p1272_p12), %s172_s5, 1024, %s174_s27, %s162_s7, %s1179_s11, %s1180_s21, %s1181_s26  }
  0x3b   : > { %185 = sbr.rel (%p1558_p7) target bundleno = 484 (0x1e4), region = 32  ;;  %s187_s9 = sand.u32 (!%p1558_p7), 1, %s1149_s13  }
  0x3c   : > { %s841_s29 = sshll.u32 (!%p1558_p7), %s187_s9, 6  ;;  %s188_s30 = scalar_lea.sflag (!%p1558_p7), [#allocation3], %s187_s9 }
  0x3d   : > { %s1312_s4 = scalar_lea.vmem (!%p1558_p7), [#allocation2], %s841_s29  ;;  %p1559_p4 = scmp.ne.s32.totalorder (!%p1558_p7), %s1552_s23, 0 }
  0x40   : > { %1136 = dma.done.wait (%p1559_p4), %s188_s30, 1024  }
  0x41   : > { %1138 = vsyncadd (%p1559_p4), %s188_s30, 4294966272 }
  0x42   : > { %1140 = dma.done.wait (%p1247_p3), [#allocation5], 3072  }
  0x43   : > { %1142 = vsyncadd (%p1247_p3), [#allocation5], 4294964224  ;;  %v1182_v0 = vmov 0.0   ;;  %v234_v1 = vld [vmem:[%s1312_s4] sm:$0xff]  ;;  %v235_v2 = vld [vmem:[%s1312_s4 + $0x8] sm:$0xff]  ;;  %vm315_vm0 = vcmask 523264   ;;  %v268_v49 = vlaneseq }
  0x44   : > { %428 = vmatprep.mubr.f32.mxu0 %v1182_v0  ;;  %500 = vmatprep.mubr.f32.mxu1 %v1182_v0  ;;  %v264_v3 = vld [vmem:[#allocation4 + $0xb0] sm:$0xff]  ;;  %v263_v4 = vld [vmem:[#allocation4 + $0xa8] sm:$0xff]  ;;  %v261_v5 = vld [vmem:[#allocation4 + $0x98] sm:$0xff]  ;;  %s843_s24 = sshll.u32 %s1157_s15, 4  ;;  %p224_p3 = scmp.lt.s32.totalorder %s1161_s16, 1  ;;  %vm672_vm1 = vcmask 130048  }
  0x45   : > { %283 = vxpose.xlu0.b32.start [1/8] (short) %v234_v1, 128  ;;  %380 = vmatprep.subr.mxu0 %v264_v3  ;;  %v260_v6 = vld [vmem:[#allocation4 + $0x90] sm:$0xff]  ;;  %v258_v7 = vld [vmem:[#allocation4 + $0x80] sm:$0xff]  ;;  %v257_v8 = vld [vmem:[#allocation4 + $0x78] sm:$0xff]  ;;  %v269_v50 = vshrl.u32 %v268_v49, 7  ;;  %p226_p12 = scmp.lt.s32.totalorder %s843_s24, 31 }
  0x46   : > { %943 = vmatprep.subr.mxu1 %v264_v3  ;;  %381 = vmatpush1.msra.mxu0 %v263_v4  ;;  %v236_v9 = vld [vmem:[%s1312_s4 + $0x10] sm:$0xff]  ;;  %v255_v10 = vld [vmem:[#allocation4 + $0x68] sm:$0xff]  ;;  %v254_v11 = vld [vmem:[#allocation4 + $0x60] sm:$0xff]  ;;  %s1575_s16 = smov (!%p224_p3, %s1161_s16), 1 }
  0x47   : > { %951 = vmatpush1.msra.mxu1 %v263_v4  ;;  %382 = vmatprep.subr.mxu0 %v261_v5  ;;  %v252_v12 = vld [vmem:[#allocation4 + $0x50] sm:$0xff]  ;;  %v251_v13 = vld [vmem:[#allocation4 + $0x48] sm:$0xff]  ;;  %v237_v14 = vld [vmem:[%s1312_s4 + $0x18] sm:$0xff]  ;;  %v278_v51 = vsub.s32 2, %v269_v50  ;;  %s1577_s24 = smov (!%p226_p12, %s843_s24), 31  ;;  %s960_s28 = smul.u32 96, %s1575_s16 }
  0x48   : > { %383 = vmatpush1.msra.mxu0 %v260_v6  ;;  %944 = vmatprep.subr.mxu1 %v261_v5  ;;  %v249_v15 = vld [vmem:[#allocation4 + $0x38] sm:$0xff]  ;;  %v248_v16 = vld [vmem:[#allocation4 + $0x30] sm:$0xff]  ;;  %v246_v17 = vld [vmem:[#allocation4 + $0x20] sm:$0xff]  ;;  %s959_s7 = smul.u32 3, %s1577_s24  ;;  %v270_v54 = vsub.s32 0, %v269_v50  ;;  %v274_v55 = vsub.s32 1, %v269_v50 }
  0x49   : > { %284 = vxpose.xlu0.b32.cont [2/8] (short) %v235_v2, 128  ;;  %384 = vmatprep.subr.mxu0 %v258_v7  ;;  %v245_v18 = vld [vmem:[#allocation4 + $0x18] sm:$0xff]  ;;  %v238_v19 = vld [vmem:[%s1312_s4 + $0x20] sm:$0xff]  ;;  %v243_v20 = vld [vmem:[#allocation4 + $0x8] sm:$0xff] }
  0x4a   : > { %952 = vmatpush1.msra.mxu1 %v260_v6  ;;  %385 = vmatpush1.msra.mxu0 %v257_v8  ;;  %v242_v21 = vld [vmem:[#allocation4] sm:$0xff]  ;;  %v239_v22 = vld [vmem:[%s1312_s4 + $0x28] sm:$0xff]  ;;  %v240_v23 = vld [vmem:[%s1312_s4 + $0x30] sm:$0xff]  ;;  %s230_s27 = sadd.s32 %s960_s28, %s959_s7 }
  0x4b   : > { %945 = vmatprep.subr.mxu1 %v258_v7  ;;  %386 = vmatprep.subr.mxu0 %v255_v10  ;;  %v241_v24 = vld [vmem:[%s1312_s4 + $0x38] sm:$0xff]  ;;  %v262_v39 = vld [vmem:[#allocation4 + $0xa0] sm:$0xff]  ;;  %v259_v40 = vld [vmem:[#allocation4 + $0x88] sm:$0xff]  ;;  %s844_s5 = sshll.u32 %s230_s27, 3 }
  0x4c   : > { %387 = vmatpush1.msra.mxu0 %v254_v11  ;;  %953 = vmatpush1.msra.mxu1 %v257_v8  ;;  %v265_v25 = vld [vmem:[#allocation4 + $0xb8] sm:$0xff]  ;;  %v256_v42 = vld [vmem:[#allocation4 + $0x70] sm:$0xff]  ;;  %v250_v45 = vld [vmem:[#allocation4 + $0x40] sm:$0xff]  ;;  %s1405_s12 = scalar_lea.vmem %s1546_s3, %s844_s5 }
  0x4d   : > { %285 = vxpose.xlu0.b32.cont [3/8] (short) %v236_v9, 128  ;;  %388 = vmatprep.subr.mxu0 %v252_v12  ;;  %v253_v43 = vld [vmem:[#allocation4 + $0x58] sm:$0xff]  ;;  %v247_v46 = vld [vmem:[#allocation4 + $0x28] sm:$0xff]  ;;  %v244_v48 = vld [vmem:[#allocation4 + $0x10] sm:$0xff] }
  0x4e   : > { %946 = vmatprep.subr.mxu1 %v255_v10  ;;  %389 = vmatpush1.msra.mxu0 %v251_v13  ;;  %v266_v52 = vld [vmem:[%s1545_s2] sm:$0x7] }
  0x4f   : > { %954 = vmatpush1.msra.mxu1 %v254_v11  ;;  %390 = vmatprep.subr.mxu0 %v249_v15  ;;  %v1393_v53 = vrot.slane %v266_v52, %v278_v51  ;;  %v1398_v56 = vrot.slane %v266_v52, %v270_v54  ;;  %v1400_v57 = vrot.slane %v266_v52, %v274_v55 }
  0x50   : > { %391 = vmatpush1.msra.mxu0 %v248_v16  ;;  %947 = vmatprep.subr.mxu1 %v252_v12 }
  0x51   : > { %286 = vxpose.xlu0.b32.cont [4/8] (short) %v237_v14, 128  ;;  %392 = vmatprep.subr.mxu0 %v246_v17 }
  0x52   : > { %955 = vmatpush1.msra.mxu1 %v251_v13  ;;  %393 = vmatpush1.msra.mxu0 %v245_v18 }
  0x53   : > { %948 = vmatprep.subr.mxu1 %v249_v15  ;;  %394 = vmatprep.subr.mxu0 %v243_v20 }
  0x54   : > { %395 = vmatpush1.msra.mxu0 %v242_v21  ;;  %956 = vmatpush1.msra.mxu1 %v248_v16 }
  0x55   : > { %287 = vxpose.xlu0.b32.cont [5/8] (short) %v238_v19, 128  ;;  %949 = vmatprep.subr.mxu1 %v246_v17 }
  0x56   : > { %957 = vmatpush1.msra.mxu1 %v245_v18 }
  0x57   : > { %950 = vmatprep.subr.mxu1 %v243_v20 }
  0x58   : > { %958 = vmatpush1.msra.mxu1 %v242_v21 }
  0x59   : > { %288 = vxpose.xlu0.b32.cont [6/8] (short) %v239_v22, 128  ;;  %903 = vmatprep.subr.mxu1 %v265_v25 }
  0x5d   : > { %289 = vxpose.xlu0.b32.cont [7/8] (short) %v240_v23, 128 }
  0x61   : > { %290 = vxpose.xlu0.b32.end [8/8] (short) %v241_v24, 128 }
  0xc1   : > { %v1332_v26 = vpop.trf.xlu0 }
  0xc2   : > { %845 = vmatmul.mubr.msk.f32.vlgmr.msra.gmra.mxu0 %vm315_vm0, %v1332_v26 }
  0xc3   : > { %434 = vmatprep.mubr.f32.mxu0 %v1182_v0 }
  0xc5   : > { %v1337_v27 = vpop.trf.xlu0 }
  0xc6   : > { %846 = vmatmul.mubr.msk.f32.gmra.mxu0 %vm315_vm0, %v1337_v27 }
  0xc7   : > { %440 = vmatprep.mubr.f32.mxu0 %v1182_v0 }
  0xc9   : > { %v1342_v28 = vpop.trf.xlu0 }
  0xca   : > { %847 = vmatmul.mubr.msk.f32.gmra.mxu0 %vm315_vm0, %v1342_v28 }
  0xcb   : > { %446 = vmatprep.mubr.f32.mxu0 %v1182_v0 }
  0xcd   : > { %v302_v29 = vpop.trf.xlu0 }
  0xce   : > { %848 = vmatmul.mubr.msk.f32.gmra.mxu0 %vm315_vm0, %v302_v29 }
  0xcf   : > { %452 = vmatprep.mubr.f32.mxu0 %v1182_v0 }
  0xd1   : > { %v303_v30 = vpop.trf.xlu0 }
  0xd2   : > { %849 = vmatmul.mubr.msk.f32.gmra.mxu0 %vm315_vm0, %v303_v30 }
  0xd3   : > { %458 = vmatprep.mubr.f32.mxu0 %v1182_v0 }
  0xd5   : > { %v304_v31 = vpop.trf.xlu0 }
  0xd6   : > { %850 = vmatmul.mubr.msk.f32.gmra.mxu0 %vm315_vm0, %v304_v31 }
  0xd7   : > { %464 = vmatprep.mubr.f32.mxu0 %v1182_v0 }
  0xd9   : > { %v305_v32 = vpop.trf.xlu0 }
  0xda   : > { %851 = vmatmul.mubr.msk.f32.gmra.mxu0 %vm315_vm0, %v305_v32 }
  0xdb   : > { %470 = vmatprep.mubr.f32.mxu0 %v1182_v0 }
  0xdd   : > { %v306_v33 = vpop.trf.xlu0 }
  0xde   : > { %852 = vmatmul.mubr.msk.f32.gmra.mxu0 %vm315_vm0, %v306_v33 }
  0xdf   : > { %476 = vmatprep.mubr.f32.mxu0 %v1182_v0 }
  0xe1   : > { %v307_v34 = vpop.trf.xlu0 }
  0xe2   : > { %853 = vmatmul.mubr.msk.f32.gmra.mxu0 %vm315_vm0, %v307_v34 }
  0xe3   : > { %482 = vmatprep.mubr.f32.mxu0 %v1182_v0 }
  0xe5   : > { %v308_v35 = vpop.trf.xlu0 }
  0xe6   : > { %854 = vmatmul.mubr.msk.f32.gmra.mxu0 %vm315_vm0, %v308_v35 }
  0xe7   : > { %488 = vmatprep.mubr.f32.mxu0 %v1182_v0 }
  0xe9   : > { %v309_v36 = vpop.trf.xlu0 }
  0xea   : > { %855 = vmatmul.mubr.msk.f32.gmra.mxu0 %vm315_vm0, %v309_v36 }
  0xeb   : > { %494 = vmatprep.mubr.f32.mxu0 %v1182_v0 }
  0xed   : > { %v310_v37 = vpop.trf.xlu0 }
  0xee   : > { %856 = vmatmul.mubr.msk.f32.gmra.mxu0 %vm315_vm0, %v310_v37 }
  0xf1   : > { %v311_v38 = vpop.trf.xlu0 }
  0xf2   : > { %857 = vmatmul.mubr.msk.f32.vlgmr.msra.gmra.mxu1 %vm315_vm0, %v311_v38 }
  0xf3   : > { %904 = vmatpush3.msra.mxu1 %v265_v25  ;;  %506 = vmatprep.mubr.f32.mxu1 %v1182_v0 }
  0xf4   : > { %905 = vmatprep.subr.mxu1 %v262_v39 }
  0xf5   : > { %906 = vmatpush3.msra.mxu1 %v262_v39  ;;  %v312_v41 = vpop.trf.xlu0 }
  0xf6   : > { %907 = vmatprep.subr.mxu1 %v259_v40  ;;  %858 = vmatmul.mubr.msk.f32.gmra.mxu1 %vm315_vm0, %v312_v41 }
  0xf7   : > { %908 = vmatpush3.msra.mxu1 %v259_v40  ;;  %512 = vmatprep.mubr.f32.mxu1 %v1182_v0 }
  0xf8   : > { %909 = vmatprep.subr.mxu1 %v256_v42 }
  0xf9   : > { %910 = vmatpush3.msra.mxu1 %v256_v42  ;;  %v313_v44 = vpop.trf.xlu0 }
  0xfa   : > { %911 = vmatprep.subr.mxu1 %v253_v43  ;;  %859 = vmatmul.mubr.msk.f32.gmra.mxu1 %vm315_vm0, %v313_v44 }
  0xfb   : > { %912 = vmatpush3.msra.mxu1 %v253_v43  ;;  %518 = vmatprep.mubr.f32.mxu1 %v1182_v0 }
  0xfc   : > { %913 = vmatprep.subr.mxu1 %v250_v45 }
  0xfd   : > { %914 = vmatpush3.msra.mxu1 %v250_v45  ;;  %v314_v47 = vpop.trf.xlu0 }
  0xfe   : > { %915 = vmatprep.subr.mxu1 %v247_v46  ;;  %860 = vmatmul.mubr.msk.f32.gmra.mxu1 %vm315_vm0, %v314_v47 }
  0xff   : > { %916 = vmatpush3.msra.mxu1 %v247_v46  ;;  %919 = vmatprep.mubr.msk.f32.mxu1 %vm315_vm0, %v1332_v26 }
 0x100   : > { %917 = vmatprep.subr.mxu1 %v244_v48 }
 0x101   : > { %918 = vmatpush3.msra.mxu1 %v244_v48 }
 0x102   : > { %920 = vmatmul.mubr.msk.f32.vlgmr.msra.gmra.mxu1 %vm315_vm0, %v1337_v27 }
 0x103   : > { %922 = vmatprep.mubr.msk.f32.mxu1 %vm315_vm0, %v1342_v28 }
 0x106   : > { %923 = vmatmul.mubr.msk.f32.gmra.mxu1 %vm315_vm0, %v302_v29 }
 0x107   : > { %925 = vmatprep.mubr.msk.f32.mxu1 %vm315_vm0, %v303_v30 }
 0x10a   : > { %926 = vmatmul.mubr.msk.f32.gmra.mxu1 %vm315_vm0, %v304_v31 }
 0x10b   : > { %928 = vmatprep.mubr.msk.f32.mxu1 %vm315_vm0, %v305_v32 }
 0x10e   : > { %929 = vmatmul.mubr.msk.f32.gmra.mxu1 %vm315_vm0, %v306_v33 }
 0x10f   : > { %931 = vmatprep.mubr.msk.f32.mxu1 %vm315_vm0, %v307_v34 }
 0x112   : > { %932 = vmatmul.mubr.msk.f32.gmra.mxu1 %vm315_vm0, %v308_v35 }
 0x113   : > { %934 = vmatprep.mubr.msk.f32.mxu1 %vm315_vm0, %v309_v36 }
 0x116   : > { %935 = vmatmul.mubr.msk.f32.gmra.mxu1 %vm315_vm0, %v310_v37 }
 0x117   : > { %937 = vmatprep.mubr.msk.f32.mxu1 %vm315_vm0, %v311_v38 }
 0x11a   : > { %938 = vmatmul.mubr.msk.f32.gmra.mxu1 %vm315_vm0, %v312_v41 }
 0x11b   : > { %940 = vmatprep.mubr.msk.f32.mxu1 %vm315_vm0, %v313_v44 }
 0x11e   : > { %941 = vmatmul.mubr.msk.f32.gmra.mxu1 %vm315_vm0, %v314_v47 }
 0x182   : > { %v430_v58 = vpop.f32.mrf.mxu0 }
 0x183   : > { %v431_v59 = vadd.f32 %v430_v58, %v1398_v56 }
 0x184   : > { %v432_v60 = vpop.f32.mrf.mxu0 }
 0x185   : > { %670 = vst [vmem:[%s1405_s12] sm:$0xff] %v431_v59  ;;  %v433_v61 = vadd.f32 %v432_v60, %v1400_v57 }
 0x186   : > { %v436_v62 = vpop.f32.mrf.mxu0 }
 0x187   : > { %671 = vst [vmem:[%s1405_s12 + $0x8] sm:$0xff] %v433_v61  ;;  %v437_v63 = vadd.f32 %v436_v62, %v1398_v56 }
 0x188   : > { %v438_v0 = vpop.f32.mrf.mxu0 }
 0x189   : > { %674 = vst [vmem:[%s1405_s12 + $0x18] sm:$0xff] %v437_v63  ;;  %v439_v1 = vadd.f32 %v438_v0, %v1400_v57 }
 0x18a   : > { %v442_v2 = vpop.f32.mrf.mxu0 }
 0x18b   : > { %675 = vst [vmem:[%s1405_s12 + $0x20] sm:$0xff] %v439_v1  ;;  %v443_v3 = vadd.f32 %v442_v2, %v1398_v56 }
 0x18c   : > { %v444_v4 = vpop.f32.mrf.mxu0 }
 0x18d   : > { %677 = vst [vmem:[%s1405_s12 + $0x30] sm:$0xff] %v443_v3  ;;  %v445_v5 = vadd.f32 %v444_v4, %v1400_v57 }
 0x18e   : > { %v448_v6 = vpop.f32.mrf.mxu0 }
 0x18f   : > { %678 = vst [vmem:[%s1405_s12 + $0x38] sm:$0xff] %v445_v5  ;;  %v449_v7 = vadd.f32 %v448_v6, %v1398_v56 }
 0x190   : > { %v450_v8 = vpop.f32.mrf.mxu0 }
 0x191   : > { %680 = vst [vmem:[%s1405_s12 + $0x48] sm:$0xff] %v449_v7  ;;  %v451_v9 = vadd.f32 %v450_v8, %v1400_v57 }
 0x192   : > { %v454_v10 = vpop.f32.mrf.mxu0 }
 0x193   : > { %681 = vst [vmem:[%s1405_s12 + $0x50] sm:$0xff] %v451_v9  ;;  %v455_v11 = vadd.f32 %v454_v10, %v1398_v56 }
 0x194   : > { %v456_v12 = vpop.f32.mrf.mxu0 }
 0x195   : > { %683 = vst [vmem:[%s1405_s12 + $0x60] sm:$0xff] %v455_v11  ;;  %v457_v13 = vadd.f32 %v456_v12, %v1400_v57 }
 0x196   : > { %v460_v14 = vpop.f32.mrf.mxu0 }
 0x197   : > { %684 = vst [vmem:[%s1405_s12 + $0x68] sm:$0xff] %v457_v13  ;;  %v461_v15 = vadd.f32 %v460_v14, %v1398_v56 }
 0x198   : > { %v462_v16 = vpop.f32.mrf.mxu0 }
 0x199   : > { %686 = vst [vmem:[%s1405_s12 + $0x78] sm:$0xff] %v461_v15  ;;  %v463_v17 = vadd.f32 %v462_v16, %v1400_v57 }
 0x19a   : > { %v466_v18 = vpop.f32.mrf.mxu0 }
 0x19b   : > { %687 = vst [vmem:[%s1405_s12 + $0x80] sm:$0xff] %v463_v17  ;;  %v467_v19 = vadd.f32 %v466_v18, %v1398_v56 }
 0x19c   : > { %v468_v20 = vpop.f32.mrf.mxu0 }
 0x19d   : > { %689 = vst [vmem:[%s1405_s12 + $0x90] sm:$0xff] %v467_v19  ;;  %v469_v21 = vadd.f32 %v468_v20, %v1400_v57 }
 0x19e   : > { %v472_v22 = vpop.f32.mrf.mxu0 }
 0x19f   : > { %690 = vst [vmem:[%s1405_s12 + $0x98] sm:$0xff] %v469_v21  ;;  %v473_v23 = vadd.f32 %v472_v22, %v1398_v56 }
 0x1a0   : > { %v474_v24 = vpop.f32.mrf.mxu0 }
 0x1a1   : > { %692 = vst [vmem:[%s1405_s12 + $0xa8] sm:$0xff] %v473_v23  ;;  %v475_v25 = vadd.f32 %v474_v24, %v1400_v57 }
 0x1a2   : > { %v478_v26 = vpop.f32.mrf.mxu0 }
 0x1a3   : > { %693 = vst [vmem:[%s1405_s12 + $0xb0] sm:$0xff] %v475_v25  ;;  %v479_v27 = vadd.f32 %v478_v26, %v1398_v56 }
 0x1a4   : > { %v480_v28 = vpop.f32.mrf.mxu0 }
 0x1a5   : > { %695 = vst [vmem:[%s1405_s12 + $0xc0] sm:$0xff] %v479_v27  ;;  %v481_v29 = vadd.f32 %v480_v28, %v1400_v57 }
 0x1a6   : > { %v484_v30 = vpop.f32.mrf.mxu0 }
 0x1a7   : > { %696 = vst [vmem:[%s1405_s12 + $0xc8] sm:$0xff] %v481_v29  ;;  %v485_v31 = vadd.f32 %v484_v30, %v1398_v56 }
 0x1a8   : > { %v486_v32 = vpop.f32.mrf.mxu0 }
 0x1a9   : > { %698 = vst [vmem:[%s1405_s12 + $0xd8] sm:$0xff] %v485_v31  ;;  %v487_v33 = vadd.f32 %v486_v32, %v1400_v57 }
 0x1aa   : > { %v490_v34 = vpop.f32.mrf.mxu0 }
 0x1ab   : > { %699 = vst [vmem:[%s1405_s12 + $0xe0] sm:$0xff] %v487_v33  ;;  %v491_v35 = vadd.f32 %v490_v34, %v1398_v56 }
 0x1ac   : > { %v492_v36 = vpop.f32.mrf.mxu0 }
 0x1ad   : > { %701 = vst [vmem:[%s1405_s12 + $0xf0] sm:$0xff] %v491_v35  ;;  %v493_v37 = vadd.f32 %v492_v36, %v1400_v57 }
 0x1ae   : > { %v496_v38 = vpop.f32.mrf.mxu0 }
 0x1af   : > { %702 = vst [vmem:[%s1405_s12 + $0xf8] sm:$0xff] %v493_v37  ;;  %v497_v39 = vadd.f32 %v496_v38, %v1398_v56 }
 0x1b0   : > { %v498_v40 = vpop.f32.mrf.mxu0 }
 0x1b1   : > { %704 = vst [vmem:[%s1405_s12 + $0x108] sm:$0xff] %v497_v39  ;;  %v499_v41 = vadd.f32 %v498_v40, %v1400_v57 }
 0x1b2   : > { %v502_v42 = vpop.f32.mrf.mxu1 }
 0x1b3   : > { %705 = vst [vmem:[%s1405_s12 + $0x110] sm:$0xff] %v499_v41  ;;  %v503_v43 = vadd.f32 %v502_v42, %v1398_v56 }
 0x1b4   : > { %v504_v44 = vpop.f32.mrf.mxu1 }
 0x1b5   : > { %707 = vst [vmem:[%s1405_s12 + $0x120] sm:$0xff] %v503_v43  ;;  %v505_v45 = vadd.f32 %v504_v44, %v1400_v57 }
 0x1b6   : > { %v508_v46 = vpop.f32.mrf.mxu1 }
 0x1b7   : > { %708 = vst [vmem:[%s1405_s12 + $0x128] sm:$0xff] %v505_v45  ;;  %v509_v47 = vadd.f32 %v508_v46, %v1398_v56 }
 0x1b8   : > { %v510_v48 = vpop.f32.mrf.mxu1 }
 0x1b9   : > { %710 = vst [vmem:[%s1405_s12 + $0x138] sm:$0xff] %v509_v47  ;;  %v511_v49 = vadd.f32 %v510_v48, %v1400_v57 }
 0x1ba   : > { %v514_v50 = vpop.f32.mrf.mxu1 }
 0x1bb   : > { %711 = vst [vmem:[%s1405_s12 + $0x140] sm:$0xff] %v511_v49  ;;  %v515_v51 = vadd.f32 %v514_v50, %v1398_v56 }
 0x1bc   : > { %v516_v52 = vpop.f32.mrf.mxu1 }
 0x1bd   : > { %713 = vst [vmem:[%s1405_s12 + $0x150] sm:$0xff] %v515_v51  ;;  %v517_v54 = vadd.f32 %v516_v52, %v1400_v57 }
 0x1be   : > { %v520_v55 = vpop.f32.mrf.mxu1 }
 0x1bf   : > { %714 = vst [vmem:[%s1405_s12 + $0x158] sm:$0xff] %v517_v54  ;;  %v521_v58 = vadd.f32 %v520_v55, %v1398_v56 }
 0x1c0   : > { %v522_v59 = vpop.f32.mrf.mxu1 }
 0x1c1   : > { %716 = vst [vmem:[%s1405_s12 + $0x168] sm:$0xff] %v521_v58  ;;  %v523_v60 = vadd.f32 %v522_v59, %v1400_v57 }
 0x1c2   : > { %v921_v61 = vpop.f32.mrf.mxu1 }
 0x1c3   : > { %717 = vst [vmem:[%s1405_s12 + $0x170] sm:$0xff] %v523_v60  ;;  %v597_v62 = vadd.f32 %v921_v61, %v1393_v53 }
 0x1c4   : > { %v591_v63 = vpop.f32.mrf.mxu1 }
 0x1c5   : > { %676 = vst.msk [vmem:[%s1405_s12 + $0x28] sm:$0xff] %vm672_vm1, %v597_v62  ;;  %v592_v0 = vadd.f32 %v591_v63, %v1393_v53 }
 0x1c6   : > { %v924_v1 = vpop.f32.mrf.mxu1 }
 0x1c7   : > { %673 = vst.msk [vmem:[%s1405_s12 + $0x10] sm:$0xff] %vm672_vm1, %v592_v0  ;;  %v607_v56 = vadd.f32 %v924_v1, %v1393_v53 }
 0x1c8   : > { %v601_v2 = vpop.f32.mrf.mxu1 }
 0x1c9   : > { %682 = vst.msk [vmem:[%s1405_s12 + $0x58] sm:$0xff] %vm672_vm1, %v607_v56  ;;  %v602_v57 = vadd.f32 %v601_v2, %v1393_v53 }
 0x1ca   : > { %v927_v3 = vpop.f32.mrf.mxu1 }
 0x1cb   : > { %679 = vst.msk [vmem:[%s1405_s12 + $0x40] sm:$0xff] %vm672_vm1, %v602_v57  ;;  %v617_v4 = vadd.f32 %v927_v3, %v1393_v53 }
 0x1cc   : > { %v611_v5 = vpop.f32.mrf.mxu1 }
 0x1cd   : > { %688 = vst.msk [vmem:[%s1405_s12 + $0x88] sm:$0xff] %vm672_vm1, %v617_v4  ;;  %v612_v6 = vadd.f32 %v611_v5, %v1393_v53 }
 0x1ce   : > { %v930_v7 = vpop.f32.mrf.mxu1 }
 0x1cf   : > { %685 = vst.msk [vmem:[%s1405_s12 + $0x70] sm:$0xff] %vm672_vm1, %v612_v6  ;;  %v627_v8 = vadd.f32 %v930_v7, %v1393_v53 }
 0x1d0   : > { %v621_v9 = vpop.f32.mrf.mxu1 }
 0x1d1   : > { %694 = vst.msk [vmem:[%s1405_s12 + $0xb8] sm:$0xff] %vm672_vm1, %v627_v8  ;;  %v622_v10 = vadd.f32 %v621_v9, %v1393_v53 }
 0x1d2   : > { %v933_v11 = vpop.f32.mrf.mxu1 }
 0x1d3   : > { %691 = vst.msk [vmem:[%s1405_s12 + $0xa0] sm:$0xff] %vm672_vm1, %v622_v10  ;;  %v637_v12 = vadd.f32 %v933_v11, %v1393_v53 }
 0x1d4   : > { %v631_v13 = vpop.f32.mrf.mxu1 }
 0x1d5   : > { %700 = vst.msk [vmem:[%s1405_s12 + $0xe8] sm:$0xff] %vm672_vm1, %v637_v12  ;;  %v632_v14 = vadd.f32 %v631_v13, %v1393_v53 }
 0x1d6   : > { %v936_v15 = vpop.f32.mrf.mxu1 }
 0x1d7   : > { %697 = vst.msk [vmem:[%s1405_s12 + $0xd0] sm:$0xff] %vm672_vm1, %v632_v14  ;;  %v647_v16 = vadd.f32 %v936_v15, %v1393_v53 }
 0x1d8   : > { %v641_v17 = vpop.f32.mrf.mxu1 }
 0x1d9   : > { %706 = vst.msk [vmem:[%s1405_s12 + $0x118] sm:$0xff] %vm672_vm1, %v647_v16  ;;  %v642_v18 = vadd.f32 %v641_v17, %v1393_v53 }
 0x1da   : > { %v939_v19 = vpop.f32.mrf.mxu1 }
 0x1db   : > { %703 = vst.msk [vmem:[%s1405_s12 + $0x100] sm:$0xff] %vm672_vm1, %v642_v18  ;;  %v657_v20 = vadd.f32 %v939_v19, %v1393_v53 }
 0x1dc   : > { %v651_v21 = vpop.f32.mrf.mxu1 }
 0x1dd   : > { %712 = vst.msk [vmem:[%s1405_s12 + $0x148] sm:$0xff] %vm672_vm1, %v657_v20  ;;  %v652_v22 = vadd.f32 %v651_v21, %v1393_v53 }
 0x1de   : > { %v942_v23 = vpop.f32.mrf.mxu1 }
 0x1df   : > { %709 = vst.msk [vmem:[%s1405_s12 + $0x130] sm:$0xff] %vm672_vm1, %v652_v22  ;;  %v667_v24 = vadd.f32 %v942_v23, %v1393_v53 }
 0x1e0   : > { %v661_v25 = vpop.f32.mrf.mxu1 }
 0x1e1   : > { %718 = vst.msk [vmem:[%s1405_s12 + $0x178] sm:$0xff] %vm672_vm1, %v667_v24  ;;  %v662_v26 = vadd.f32 %v661_v25, %v1393_v53 }
 0x1e3   : > { %715 = vst.msk [vmem:[%s1405_s12 + $0x160] sm:$0xff] %vm672_vm1, %v662_v26 }
 0x1e4 PF: > { %s17_s19 = sadd.s32 1, %s1173_s19   ;;  %s1560_s20 = sld [smem:[#allocation8_spill]] }
 0x1e5   : > { %p14_p6 = scmp.ge.s32.totalorder %s17_s19, 6   ;;  %s1561_s12 = smov %s1149_s13 }
 0x1e6   : > { %s1562_s13 = smov %s1153_s14  ;;  %s1563_s14 = smov %s1303_s1 }
 0x1e7   : > { %s1564_s15 = smov %s1165_s17  ;;  %s1565_s16 = smov %s1169_s18 }
 0x1e8   : > { %s1567_s18 = smov %s1573_s8  ;;  %16 = sbr.rel (!%p14_p6) target bundleno = 8 (0x8), region = 76 }
 0x1ea   : > { %s1566_s17 = smov %s1560_s20 }
 0x1ed   :  { %751 = vsyncpa [#allocation3], 1 }
 0x1ee   :  { %753 = vsyncpa [#allocation3 + $0x1], 1 }
 0x1ef   :  { %754 = vsyncpa [#allocation5], 1 }

</bundles_post_ra>
